<compile_context>
chip_gen: v7x
topology: tpu7x:2x2x1
jax: 0.10.0
libtpu: 0.0.40
codegen_flags: <defaults>
</compile_context>

<pallas_src>
import math

import jax
import jax.numpy as jnp
from jax import lax
from jax.experimental import pallas as pl
from jax.experimental.pallas import tpu as pltpu


def _cdiv(a, b):
    return -(-a // b)


def _round_up(a, b):
    return _cdiv(a, b) * b


def _drop_path_kernel(ob_ref, orr_ref, fb_ref, fr_ref, kp_ref,
                      scale_ref, x_ref, o_ref):
    # ob/orr/fb/fr: per-step block indices (consumed by the index_maps only).
    # kp_ref[t]   : 1 iff any sample in this step's batch block is kept.
    # scale_ref   : (TB, 1, 1) f32 per-sample scale (1/keep_prob if kept, 0).
    # x_ref/o_ref : (TB, TR, LN) lane-dense tile.
    t = pl.program_id(0)

    @pl.when(kp_ref[t] != 0)
    def _():
        o_ref[...] = (x_ref[...].astype(jnp.float32)
                      * scale_ref[...]).astype(o_ref.dtype)

    @pl.when(kp_ref[t] == 0)
    def _():
        # Entirely dropped block: the x DMA was elided (x_ref holds stale
        # data from the last kept block) -- just write zeros.
        o_ref[...] = jnp.zeros_like(o_ref)


def _plan(B, N, itemsize, max_block_bytes=4 * 1024 * 1024):
    """Choose lane width LN, padded rows/sample R, row tile TR, batch tile TB."""
    # Lane width: multiple of 128 minimizing per-sample padding, prefer wider.
    LN = min((512, 256, 128), key=lambda c: (_round_up(N, c), -c))
    m = max(8, 32 // itemsize)              # dtype-aware sublane multiple
    R0 = _cdiv(N, LN)                       # rows needed per sample
    row_budget = max(m, max_block_bytes // (LN * itemsize))

    if R0 <= row_budget:
        # Whole (padded) sample fits one block: pack samples along the batch.
        R, TR = R0, R0
        tb_cap = max(1, row_budget // R0)
        TB = max(d for d in range(1, min(B, tb_cap) + 1) if B % d == 0)
        # Keep >= 2 grid steps when possible so v7x megacore gets work.
        if TB == B and B >= 2:
            TB = max(d for d in range(1, B // 2 + 1) if B % d == 0)
    else:
        # Sample larger than one block: tile rows, one sample per block.
        TB = 1
        tr_max = (row_budget // m) * m
        nrt = _cdiv(R0, tr_max)             # row tiles per sample
        TR = _round_up(_cdiv(R0, nrt), m)   # balanced, 8/16/32-aligned
        R = nrt * TR                        # pad rows up to a TR multiple
    return LN, R, TR, TB


def drop_path(x, key, drop_prob: float = 0.0, training: bool = True):
    """DropPath forward. x: (B, ...). Returns an array of x's shape/dtype."""
    if drop_prob == 0.0 or not training:
        return x

    keep_prob = 1.0 - drop_prob
    orig_shape = x.shape
    B = x.shape[0]
    N = math.prod(x.shape[1:])

    # Per-sample standard-normal noise in x.dtype compared with keep_prob
    # (matches `torch.randn(shape, dtype=x.dtype) < keep_prob` verbatim).
    noise = jax.random.normal(key, (B,), dtype=x.dtype)
    mask = noise < keep_prob
    scale = jnp.where(mask, 1.0 / keep_prob, 0.0).astype(jnp.float32)

    LN, R, TR, TB = _plan(B, N, x.dtype.itemsize)
    n_pad = R * LN

    xf = x.reshape(B, N)
    if n_pad != N:
        xf = jnp.pad(xf, ((0, 0), (0, n_pad - N)))
    x3 = xf.reshape(B, R, LN)
    scale3 = scale.reshape(B, 1, 1)

    grid_b, grid_r = B // TB, R // TR
    num_steps = grid_b * grid_r

    # Per-step scalar-prefetch metadata (int32, SMEM):
    #   ob/orr : output (and scale) block indices for step t
    #   fb/fr  : x block indices to fetch; carries the last kept block forward
    #            for all-dropped steps so the input DMA is elided
    #   kp     : 1 if any sample in the step's batch block is kept
    step = jnp.arange(num_steps, dtype=jnp.int32)
    ob = step // grid_r
    orr = step % grid_r
    keep_blk = (scale.reshape(grid_b, TB) != 0.0).any(axis=1)
    keep_step = jnp.repeat(keep_blk, grid_r)
    kp = keep_step.astype(jnp.int32)
    last_kept = lax.cummax(jnp.where(keep_step, step, -1), axis=0)
    src = jnp.maximum(last_kept, 0)
    fb = src // grid_r
    fr = src % grid_r

    out_spec = pl.BlockSpec(
        (TB, TR, LN), lambda t, ob_, orr_, fb_, fr_, kp_: (ob_[t], orr_[t], 0))
    x_spec = pl.BlockSpec(
        (TB, TR, LN), lambda t, ob_, orr_, fb_, fr_, kp_: (fb_[t], fr_[t], 0))
    scale_spec = pl.BlockSpec(
        (TB, 1, 1), lambda t, ob_, orr_, fb_, fr_, kp_: (ob_[t], 0, 0))

    out = pl.pallas_call(
        _drop_path_kernel,
        out_shape=jax.ShapeDtypeStruct((B, R, LN), x.dtype),
        grid_spec=pltpu.PrefetchScalarGridSpec(
            num_scalar_prefetch=5,
            grid=(num_steps,),
            in_specs=[scale_spec, x_spec],
            out_specs=out_spec,
        ),
        compiler_params=pltpu.CompilerParams(
            dimension_semantics=("parallel",),
            vmem_limit_bytes=32 * 1024 * 1024),
    )(ob, orr, fb, fr, kp, scale3, x3)

    out = out.reshape(B, n_pad)
    if n_pad != N:
        out = out[:, :N]
    return out.reshape(orig_shape)


def _ref_drop_path(x, key, drop_prob):
    """Pure-JAX reference: same expression as the PyTorch module."""
    keep_prob = 1.0 - drop_prob
    B = x.shape[0]
    noise = jax.random.normal(key, (B,), dtype=x.dtype)
    mask = (noise < keep_prob).astype(x.dtype).reshape((B,) + (1,) * (x.ndim - 1))
    return x * mask / keep_prob


if __name__ == "__main__":
    key = jax.random.PRNGKey(0)
    kx, kn, kx2, kn2 = jax.random.split(key, 4)

    # Main check at the module-consistent small shape.
    B, C, H, W = 2, 4, 16, 16
    x = jax.random.normal(kx, (B, C, H, W), dtype=jnp.float32)
    drop_prob = 0.3

    out = jax.block_until_ready(drop_path(x, kn, drop_prob=drop_prob,
                                          training=True))
    ref = _ref_drop_path(x, kn, drop_prob)
    assert out.shape == x.shape and out.dtype == x.dtype
    assert jnp.allclose(out, ref, rtol=1e-6, atol=1e-6), "mismatch vs reference"

    # Second check exercising the padding + multi-step + dropped-block-skip
    # paths (N not a multiple of 128, B=3).
    x2 = jax.random.normal(kx2, (3, 5, 7, 9), dtype=jnp.float32)
    out2 = jax.block_until_ready(drop_path(x2, kn2, drop_prob=0.5,
                                           training=True))
    ref2 = _ref_drop_path(x2, kn2, 0.5)
    assert jnp.allclose(out2, ref2, rtol=1e-6, atol=1e-6), "mismatch (padded case)"

    # Eval mode / drop_prob == 0 -> identity.
    out_eval = jax.block_until_ready(drop_path(x, kn, drop_prob=drop_prob,
                                               training=False))
    assert jnp.array_equal(out_eval, x)

    print("KERNEL_OK")
</pallas_src>

<mosaic_0001>
module attributes {stable_mosaic.version = 11 : i64} {
  func.func @_drop_path_kernel(%arg0: i32, %arg1: memref<2xi32, #tpu.memory_space<smem>>, %arg2: memref<2xi32, #tpu.memory_space<smem>>, %arg3: memref<2xi32, #tpu.memory_space<smem>>, %arg4: memref<2xi32, #tpu.memory_space<smem>>, %arg5: memref<2xi32, #tpu.memory_space<smem>>, %arg6: memref<1x1x1xf32, #tpu.memory_space<vmem>>, %arg7: memref<1x2x512xf32, #tpu.memory_space<vmem>>, %arg8: memref<1x2x512xf32, #tpu.memory_space<vmem>>) attributes {dimension_semantics = [#tpu.dimension_semantics<parallel>], iteration_bounds = array<i64: 2>, scalar_prefetch = 5 : i64, scratch_operands = 0 : i64, tpu.core_type = #tpu.core_type<tc>, window_params = [{transform_indices = @transform_0, window_bounds = array<i64: 1, 1, 1>}, {transform_indices = @transform_1, window_bounds = array<i64: 1, 2, 512>}, {transform_indices = @transform_2, window_bounds = array<i64: 1, 2, 512>}]} {
    %0 = arith.index_cast %arg0 : i32 to index
    %1 = memref.load %arg5[%0] : memref<2xi32, #tpu.memory_space<smem>>
    %c0_i32 = arith.constant 0 : i32
    %2 = arith.cmpi ne, %1, %c0_i32 : i32
    %3 = arith.extui %2 : i1 to i32
    %c0_i32_0 = arith.constant 0 : i32
    %4 = arith.cmpi ne, %3, %c0_i32_0 : i32
    scf.if %4 {
      %c0 = arith.constant 0 : index
      %c0_3 = arith.constant 0 : index
      %c0_4 = arith.constant 0 : index
      %10 = vector.load %arg7[%c0, %c0_3, %c0_4] : memref<1x2x512xf32, #tpu.memory_space<vmem>>, vector<1x2x512xf32>
      %c0_5 = arith.constant 0 : index
      %c0_6 = arith.constant 0 : index
      %c0_7 = arith.constant 0 : index
      %11 = vector.load %arg6[%c0_5, %c0_6, %c0_7] : memref<1x1x1xf32, #tpu.memory_space<vmem>>, vector<1x1x1xf32>
      %12 = vector.broadcast %11 : vector<1x1x1xf32> to vector<1x2x512xf32>
      %13 = arith.mulf %10, %12 : vector<1x2x512xf32>
      %c0_8 = arith.constant 0 : index
      %c0_9 = arith.constant 0 : index
      %c0_10 = arith.constant 0 : index
      %14 = vector.load %arg8[%c0_8, %c0_9, %c0_10] : memref<1x2x512xf32, #tpu.memory_space<vmem>>, vector<1x2x512xf32>
      tpu.vector_store %arg8[%c0_8, %c0_9, %c0_10], %13 {strides = array<i32>} : memref<1x2x512xf32, #tpu.memory_space<vmem>>, vector<1x2x512xf32>,
    } else {
    }
    %5 = arith.index_cast %arg0 : i32 to index
    %6 = memref.load %arg5[%5] : memref<2xi32, #tpu.memory_space<smem>>
    %c0_i32_1 = arith.constant 0 : i32
    %7 = arith.cmpi eq, %6, %c0_i32_1 : i32
    %8 = arith.extui %7 : i1 to i32
    %c0_i32_2 = arith.constant 0 : i32
    %9 = arith.cmpi ne, %8, %c0_i32_2 : i32
    scf.if %9 {
      %cst = arith.constant 0.000000e+00 : f32
      %10 = vector.broadcast %cst : f32 to vector<1x2x512xf32>
      %c0 = arith.constant 0 : index
      %c0_3 = arith.constant 0 : index
      %c0_4 = arith.constant 0 : index
      %11 = vector.load %arg8[%c0, %c0_3, %c0_4] : memref<1x2x512xf32, #tpu.memory_space<vmem>>, vector<1x2x512xf32>
      tpu.vector_store %arg8[%c0, %c0_3, %c0_4], %10 {strides = array<i32>} : memref<1x2x512xf32, #tpu.memory_space<vmem>>, vector<1x2x512xf32>,
    } else {
    }
    return
  }
  func.func @transform_0(%arg0: i32, %arg1: memref<2xi32, #tpu.memory_space<smem>>, %arg2: memref<2xi32, #tpu.memory_space<smem>>, %arg3: memref<2xi32, #tpu.memory_space<smem>>, %arg4: memref<2xi32, #tpu.memory_space<smem>>, %arg5: memref<2xi32, #tpu.memory_space<smem>>) -> (i32, i32, i32) {
    %0 = arith.index_cast %arg0 : i32 to index
    %1 = memref.load %arg1[%0] : memref<2xi32, #tpu.memory_space<smem>>
    %c0_i32 = arith.constant 0 : i32
    %c0_i32_0 = arith.constant 0 : i32
    %c0_i32_1 = arith.constant 0 : i32
    return %1, %c0_i32, %c0_i32_0 : i32, i32, i32
  }
  func.func @transform_1(%arg0: i32, %arg1: memref<2xi32, #tpu.memory_space<smem>>, %arg2: memref<2xi32, #tpu.memory_space<smem>>, %arg3: memref<2xi32, #tpu.memory_space<smem>>, %arg4: memref<2xi32, #tpu.memory_space<smem>>, %arg5: memref<2xi32, #tpu.memory_space<smem>>) -> (i32, i32, i32) {
    %0 = arith.index_cast %arg0 : i32 to index
    %1 = memref.load %arg3[%0] : memref<2xi32, #tpu.memory_space<smem>>
    %2 = arith.index_cast %arg0 : i32 to index
    %3 = memref.load %arg4[%2] : memref<2xi32, #tpu.memory_space<smem>>
    %c0_i32 = arith.constant 0 : i32
    %c0_i32_0 = arith.constant 0 : i32
    return %1, %3, %c0_i32 : i32, i32, i32
  }
  func.func @transform_2(%arg0: i32, %arg1: memref<2xi32, #tpu.memory_space<smem>>, %arg2: memref<2xi32, #tpu.memory_space<smem>>, %arg3: memref<2xi32, #tpu.memory_space<smem>>, %arg4: memref<2xi32, #tpu.memory_space<smem>>, %arg5: memref<2xi32, #tpu.memory_space<smem>>) -> (i32, i32, i32) {
    %0 = arith.index_cast %arg0 : i32 to index
    %1 = memref.load %arg1[%0] : memref<2xi32, #tpu.memory_space<smem>>
    %2 = arith.index_cast %arg0 : i32 to index
    %3 = memref.load %arg2[%2] : memref<2xi32, #tpu.memory_space<smem>>
    %c0_i32 = arith.constant 0 : i32
    %c0_i32_0 = arith.constant 0 : i32
    return %1, %3, %c0_i32 : i32, i32, i32
  }
}

</mosaic_0001>

<bundles_post_ra>
// kernel: tpu_custom_call.1
= control target key start
LH: loop header
LB: loop body
LE: loop exit
PB: predicated region body
PF: predicated region fallthrough
CT: control target
= control target key end

     0   :  { %s717_s0 = inlined_call_operand.vmem [shape: s32[2], index: 0, kind: input, shape index: {}]   ;;  %s718_s5 = inlined_call_operand.vmem [shape: f32[2,1,1], index: 5, kind: input, shape index: {}]   ;;  %s719_s6 = inlined_call_operand.vmem [shape: f32[2,2,512], index: 6, kind: input, shape index: {}]   ;;  %s720_s7 = inlined_call_operand.hbm [shape: f32[2,2,512], index: 7, kind: output, shape index: {}]   ;;  %s721_s1 = inlined_call_operand.vmem [shape: s32[2], index: 1, kind: input, shape index: {}]   ;;  %s722_s2 = inlined_call_operand.vmem [shape: s32[2], index: 2, kind: input, shape index: {}]   ;;  %s723_s3 = inlined_call_operand.vmem [shape: s32[2], index: 3, kind: input, shape index: {}]   ;;  %s724_s4 = inlined_call_operand.vmem [shape: s32[2], index: 4, kind: input, shape index: {}]  }
   0x1   :  { %s12_s26 = sshll.u32 %s717_s0, 4  ;;  %s16_s29 = sshll.u32 %s721_s1, 4  ;;  %s13_s26 = int_to_ptr.vmem [resolvable:$true] %s12_s26  ;;  %s17_s29 = int_to_ptr.vmem [resolvable:$true] %s16_s29 }
   0x2   :  { %s417_s30 = scalar_lea.vmem %s13_s26, 16  ;;  %p422_p1 = scmp.lt.s32.totalorder %s13_s26, %s13_s26 }
   0x3   :  { %p418_p0 = scmp.ne.s32.totalorder %s13_s26, %s417_s30  ;;  %p423_p2 = scmp.lt.s32.totalorder %s417_s30, %s417_s30 }
   0x5   :  { %p424_p3 = por %p423_p2, %p422_p1 }
   0x7   :  { %p425_p4 = pnand %p424_p3, %p418_p0 }
   0x9   :  { %428 = shalt.err (!%p425_p4)  }
   0xa   :  { %s543_s8 = smov [#allocation3]   ;;  %s429_s9 = scalar_lea.vmem %s17_s29, 16 }
   0xb   :  { %15 = dma.vmem_to_smem %s13_s26, 16, %s543_s8, [#allocation2] }
   0xc   :  { %p430_p5 = scmp.ne.s32.totalorder %s17_s29, %s429_s9  ;;  %p434_p6 = scmp.lt.s32.totalorder %s17_s29, %s17_s29 }
   0xd   :  { %p435_p7 = scmp.lt.s32.totalorder %s429_s9, %s429_s9 }
   0xf   :  { %p436_p8 = por %p435_p7, %p434_p6 }
  0x11   :  { %p437_p9 = pnand %p436_p8, %p430_p5 }
  0x13   :  { %440 = shalt.err (!%p437_p9)  }
  0x14   :  { %s544_s0 = smov [#allocation4]   ;;  %s20_s11 = sshll.u32 %s722_s2, 4  ;;  %s21_s11 = int_to_ptr.vmem [resolvable:$true] %s20_s11 }
  0x15   :  { %19 = dma.vmem_to_smem %s17_s29, 16, %s544_s0, [#allocation2] }
  0x16   :  { %s24_s14 = sshll.u32 %s723_s3, 4  ;;  %s441_s15 = scalar_lea.vmem %s21_s11, 16  ;;  %s25_s14 = int_to_ptr.vmem [resolvable:$true] %s24_s14 }
  0x17   :  { %p442_p10 = scmp.ne.s32.totalorder %s21_s11, %s441_s15  ;;  %p446_p11 = scmp.lt.s32.totalorder %s21_s11, %s21_s11 }
  0x18   :  { %p447_p12 = scmp.lt.s32.totalorder %s441_s15, %s441_s15 }
  0x1a   :  { %p448_p13 = por %p447_p12, %p446_p11 }
  0x1c   :  { %p449_p0 = pnand %p448_p13, %p442_p10 }
  0x1e   :  { %452 = shalt.err (!%p449_p0)  }
  0x1f   :  { %s545_s16 = smov [#allocation5]   ;;  %s453_s17 = scalar_lea.vmem %s25_s14, 16 }
  0x20   :  { %23 = dma.vmem_to_smem %s21_s11, 16, %s545_s16, [#allocation2] }
  0x21   :  { %p454_p1 = scmp.ne.s32.totalorder %s25_s14, %s453_s17  ;;  %p458_p2 = scmp.lt.s32.totalorder %s25_s14, %s25_s14 }
  0x22   :  { %p459_p3 = scmp.lt.s32.totalorder %s453_s17, %s453_s17 }
  0x24   :  { %p460_p4 = por %p459_p3, %p458_p2 }
  0x26   :  { %p461_p5 = pnand %p460_p4, %p454_p1 }
  0x28   :  { %464 = shalt.err (!%p461_p5)  }
  0x29   :  { %s546_s2 = smov [#allocation6]   ;;  %s28_s19 = sshll.u32 %s724_s4, 4  ;;  %s29_s19 = int_to_ptr.vmem [resolvable:$true] %s28_s19 }
  0x2a   :  { %27 = dma.vmem_to_smem %s25_s14, 16, %s546_s2, [#allocation2] }
  0x2b   :  { %s465_s20 = scalar_lea.vmem %s29_s19, 16  ;;  %p470_p7 = scmp.lt.s32.totalorder %s29_s19, %s29_s19 }
  0x2c   :  { %p466_p6 = scmp.ne.s32.totalorder %s29_s19, %s465_s20  ;;  %p471_p8 = scmp.lt.s32.totalorder %s465_s20, %s465_s20 }
  0x2e   :  { %p472_p9 = por %p471_p8, %p470_p7 }
  0x30   :  { %p473_p10 = pnand %p472_p9, %p466_p6 }
  0x32   :  { %476 = shalt.err (!%p473_p10)  }
  0x33   :  { %s547_s21 = smov [#allocation7]  }
  0x34   :  { %31 = dma.vmem_to_smem %s29_s19, 16, %s547_s21, [#allocation2] }
  0x35   :  { %521 = dma.done.wait [#allocation2], 80 }
  0x36   :  { %522 = vsyncadd [#allocation2], 4294967216 }
  0x37   :  { %33 = sfence }
  0x38   :  { %34 = vsyncpa [#allocation9], 0 }
  0x39   :  { %36 = vsyncpa [#allocation9 + $0x1], 0  ;;  %s606_s22 = smov 0   ;;  %s608_s23 = smov 0  }
  0x3a   :  { %s610_s4 = smov 0   ;;  %s612_s24 = smov 0  }
  0x3b LB: > { %s627_s25 = sadd.s32 4294967295, %s541_s24   ;;  %s349_s26 = sadd.s32 4294967294, %s541_s24   ;;  %s541_s24 = sphi %s612_s24, %s730_s24   ;;  %s537_s4 = sphi %s610_s4, %s729_s4   ;;  %s533_s23 = sphi %s608_s23, %s728_s23   ;;  %s529_s22 = sphi %s606_s22, %s727_s22  }
  0x3c   : > { %s631_s27 = sadd.s32 1, %s541_s24   ;;  %s106_s28 = sld [smem:[#allocation3 + %s541_s24]] }
  0x3d   : > { %s107_s29 = sld [smem:[#allocation4 + %s541_s24]]  ;;  %p125_p11 = scmp.ne.s32.totalorder %s537_s4, %s533_s23 }
  0x3e   : > { %s108_s30 = sld [smem:[#allocation3 + %s631_s27]]  ;;  %p126_p12 = scmp.eq.s32.totalorder %s627_s25, 1 }
  0x3f   : > { %s109_s8 = sld [smem:[#allocation4 + %s631_s27]]  ;;  %p131_p13 = scmp.ne.s32.totalorder %s533_s23, %s529_s22 }
  0x40   : > { %p132_p0 = scmp.eq.s32.totalorder %s349_s26, 1  ;;  %p642_p1 = por %p126_p12, %p125_p11 }
  0x41   : > { %p352_p2 = scmp.ge.s32.totalorder %s541_s24, 1  ;;  %p174_p4 = scmp.lt.s32.totalorder %s541_s24, 3 }
  0x42   : > { %p647_p3 = por %p132_p0, %p131_p13  ;;  %s115_s12 = sadd.s32 1, %s537_s4 }
  0x43   : > { %p175_p5 = pnand %p352_p2, %p174_p4 }
  0x44   : > { %s110_s1 = ssub.s32 %s106_s28, %s108_s30  ;;  %s203_s14 = sand.u32 (!%p175_p5), 1, %s533_s23  }
  0x45   : > { %s111_s10 = ssub.s32 %s107_s29, %s109_s8  ;;  %178 = sbr.rel (%p175_p5) target bundleno = 257 (0x101), region = 28 }
  0x46   : > { %s112_s11 = sor.u32 %s111_s10, %s110_s1  ;;  %s206_s15 = sld [smem:[#allocation3 + %s627_s25]] (!%p175_p5) }
  0x47   : > { %p113_p6 = scmp.eq.s32.totalorder %s112_s11, 0  ;;  %s353_s16 = sshll.u32 (!%p175_p5), %s203_s14, 3 }
  0x48   : > { %s211_s17 = sld [smem:[#allocation5 + %s627_s25]] (!%p175_p5)  ;;  %s205_s10 = scalar_lea.vmem (!%p175_p5), [#allocation8], %s353_s16 }
  0x49   : > { %s654_s13 = scalar_select %p113_p6, %s537_s4, %s115_s12  }
  0x4a   : > { %s212_s2 = sld [smem:[#allocation6 + %s627_s25]] (!%p175_p5) }
  0x4b   : > { %s226_s3 = sld [smem:[#allocation7 + %s627_s25]] (!%p175_p5) }
  0x4c   : > { %p207_p7 = scmp.lt.s32.totalorder %s206_s15, 1 }
  0x4e   : > { %p213_p8 = scmp.lt.s32.totalorder %s211_s17, 1  ;;  %s732_s15 = smov (!%p207_p7, %s206_s15), 1 }
  0x4f   : > { %s209_s20 = scalar_lea.vmem %s718_s5, %s732_s15 }
  0x50   : > { %s734_s17 = smov (!%p213_p8, %s211_s17), 1  ;;  %p215_p9 = scmp.lt.s32.totalorder %s212_s2, 0 }
  0x51   : > { %s355_s21 = sshll.u32 %s734_s17, 2  ;;  %p357_p10 = scmp.eq.s32.totalorder %s226_s3, 0 }
  0x52   : > { %s736_s2 = smov (!%p215_p9, %s212_s2), 0  ;;  %v358_v0 = vld [vmem:[%s209_s20] ss:$0 sm:$0xff] (!%p357_p10)  ;;  %v548_v1 = vmov (!%p357_p10), 0  }
  0x53   : > { %s354_s26 = sshll.u32 %s736_s2, 2  ;;  %230 = sbr.rel (%p357_p10) target bundleno = 215 (0xd7), region = 32  ;;  %416 = vset.pattern.permute.xlu0 (!%p357_p10), %v548_v1 }
  0x54   : > { %s219_s28 = sadd.s32 %s355_s21, %s354_s26  ;;  %239 = vperm.xlu0 (!%p357_p10), %416, %v358_v0  }
  0x55   : > { %s356_s29 = sshll.u32 %s219_s28, 1 }
  0x56   : > { %s221_s1 = scalar_lea.vmem %s719_s6, %s356_s29 }
  0x57   : > { %v231_v2 = vld [vmem:[%s221_s1] sm:$0xff] (!%p357_p10) }
  0xd3   : > { %v240_v3 = vpop.permute.xlu0 %239 }
  0xd4   : > { %v242_v4 = vmul.f32 %v240_v3, %v231_v2 }
  0xd6   : > { %243 = vst [vmem:[%s205_s10] sm:$0xff] %v242_v4 }
  0xd7 PF: > { %s244_s11 = sld [smem:[#allocation7 + %s627_s25]] }
  0xdd   : > { %p359_p11 = scmp.ne.s32.totalorder %s244_s11, 0 }
  0xde   : > { %v549_v5 = vmov (!%p359_p11), 0.0  }
  0xdf   : > { %248 = sbr.rel (%p359_p11) target bundleno = 230 (0xe6), region = 36  ;;  %249 = vst [vmem:[%s205_s10] sm:$0xff] (!%p359_p11), %v549_v5 }
  0xe6 PF: > { %s366_s12 = scalar_select %p642_p1, [#allocation3], [#allocation10] }
  0xe7   : > { %s738_s25 = smov (!%p642_p1, %s627_s25), 0  ;;  %s269_s2 = sshll.u32 %s205_s10, 4  ;;  %s677_s2 = int_to_ptr.vmem [resolvable:$true] %s269_s2 }
  0xe8   : > { %s368_s15 = scalar_select %p642_p1, [#allocation4], [#allocation11] }
  0xe9   : > { %s258_s16 = sld [smem:[%s366_s12 + %s738_s25]]  ;;  %s251_s29 = scalar_lea.sflag [#allocation9], %s203_s14 }
  0xea   : > { %s259_s17 = sld [smem:[%s368_s15 + %s738_s25]]  ;;  %s477_s30 = scalar_lea.vmem %s677_s2, 128 }
  0xeb   : > { %p478_p12 = scmp.ne.s32.totalorder %s677_s2, %s477_s30  ;;  %s550_s25 = smov [#allocation8]  }
  0xec   : > { %s481_s8 = sshll.u32 %s550_s25, 4  ;;  %s482_s8 = int_to_ptr.vmem [resolvable:$false] %s481_s8 }
  0xed   : > { %p479_p13 = pnand %p478_p12, %p642_p1  ;;  %s483_s1 = scalar_lea.vmem %s482_s8, 256 }
  0xee   : > { %p484_p2 = scmp.lt.s32.totalorder %s677_s2, %s482_s8  ;;  %p485_p4 = scmp.lt.s32.totalorder %s483_s1, %s477_s30 }
  0xef   : > { %s362_s3 = sshll.u32 %s258_s16, 2  ;;  %p480_p0 = pneg %p479_p13 }
  0xf0   : > { %s361_s18 = sshll.u32 %s259_s17, 2  ;;  %p486_p5 = por %p485_p4, %p484_p2 }
  0xf1   : > { %s265_s19 = sadd.s32 %s362_s3, %s361_s18 }
  0xf2   : > { %s363_s20 = sshll.u32 %s265_s19, 5  ;;  %p487_p6 = pnand %p486_p5, %p480_p0 }
  0xf3   : > { %s267_s28 = scalar_lea.hbm %s720_s7, %s363_s20 }
  0xf4   : > { %490 = shalt.err (!%p487_p6)
}
  0xf5   : > { %s491_s10 = scalar_lea.hbm %s267_s28, 128  ;;  %s495_s12 = scalar_lea.hbm %s720_s7, 256 }
  0xf6   : > { %p492_p7 = scmp.ne.s32.totalorder %s267_s28, %s491_s10  ;;  %p496_p10 = scmp.lt.u32.totalorder %s267_s28, %s720_s7 }
  0xf7   : > { %p497_p11 = scmp.lt.u32.totalorder %s495_s12, %s491_s10  ;;  %p499_p13 = scmp.lt.u32.totalorder %s491_s10, %s267_s28 }
  0xf8   : > { %p493_p8 = pnand %p492_p7, %p642_p1 }
  0xf9   : > { %p498_p12 = por %p497_p11, %p496_p10 }
  0xfa   : > { %p494_p9 = pneg %p493_p8 }
  0xfb   : > { %p500_p2 = por %p499_p13, %p498_p12 }
  0xfd   : > { %p501_p0 = pnand %p500_p2, %p494_p9 }
  0xff   : > { %504 = shalt.err (!%p501_p0)
}
 0x100   : > { %370 = dma.vmem_to_hbm [thread:$0]  (%p642_p1), %s677_s2, 128, %s267_s28, %s251_s29  }
 0x101 PF: > { %p376_p4 = scmp.ge.s32.totalorder %s541_s24, 2  ;;  %s281_s17 = sand.u32 1, %s529_s22  }
 0x102   : > { %s282_s3 = scalar_lea.sflag [#allocation9], %s281_s17 }
 0x103   : > { %p373_p5 = pnand %p376_p4, %p647_p3 }
 0x105   : > { %524 = dma.done.wait (!%p373_p5), %s282_s3, 128  }
 0x106   : > { %526 = vsyncadd (!%p373_p5), %s282_s3, 4294967168  ;;  %p39_p6 = scmp.ge.s32.totalorder %s631_s27, 4   ;;  %s727_s22 = smov %s533_s23 }
 0x107   : > { %s728_s23 = smov %s537_s4  ;;  %s729_s4 = smov %s654_s13 }
 0x108   : > { %s730_s24 = smov %s631_s27  ;;  %41 = sbr.rel (!%p39_p6) target bundleno = 59 (0x3b), region = 74 }
 0x10f   :  { %287 = vsyncpa [#allocation9], 1 }
 0x110   :  { %289 = vsyncpa [#allocation9 + $0x1], 1 }

</bundles_post_ra>
